<compile_context>
chip_gen: v5e
topology: v5e:2x2
jax: 0.10.0
libtpu: 0.0.40
codegen_flags: <defaults>
</compile_context>

<pallas_src>
import functools

import jax
import jax.numpy as jnp
from jax.experimental import pallas as pl
from jax.experimental.pallas import tpu as pltpu


def _round_up(x, m):
    return (x + m - 1) // m * m


@functools.lru_cache(maxsize=None)
def _vmem_limit_bytes():
    # Generation-aware VMEM budget: 3/4 of physical per-core VMEM, capped at 96 MiB.
    # v7x has 64 MiB per TensorCore; v5e/v6e have 128 MiB.
    try:
        cap = int(pltpu.get_tpu_info().vmem_capacity_bytes)
    except Exception:
        cap = 64 * 1024 * 1024  # conservative fallback
    return int(min((cap * 3) // 4, 96 * 1024 * 1024))


# ---------------------------------------------------------------------------
# Pallas kernels
# ---------------------------------------------------------------------------
def _conv_bias_kernel(x_ref, w_ref, b_ref, o_ref, *, relu):
    # bf16 x bf16 -> f32 accumulate on the MXU, f32 epilogue on the VPU.
    acc = jnp.dot(x_ref[...], w_ref[...], preferred_element_type=jnp.float32)
    y = acc + b_ref[...]
    if relu:
        y = jnp.maximum(y, 0.0)
    o_ref[...] = y


def _conv_bias_add_relu_kernel(x_ref, w_ref, b_ref, r_ref, o_ref):
    acc = jnp.dot(x_ref[...], w_ref[...], preferred_element_type=jnp.float32)
    o_ref[...] = jnp.maximum(acc + b_ref[...] + r_ref[...], 0.0)


def _maxpool_kernel(x_ref, o_ref):
    # x_ref block: (9 taps, TM, C).  Reduce the taps on the VPU (8 jnp.maximum ops),
    # write one lane-dense (TM, C) output block.
    o_ref[...] = jnp.max(x_ref[...], axis=0)


# ---------------------------------------------------------------------------
# Kernel wrappers
# ---------------------------------------------------------------------------
def _choose_m_tile(M):
    if M >= 2048:
        return 256
    if M >= 128:
        return 128
    # Late ResNet stages have tiny M (2..32): use a single small tile instead of
    # padding to 128 (bf16 sublane packing wants multiples of 16).
    return _round_up(M, 16)


def _choose_n_tile(Cout):
    # Tile Cout with lane-dense 128-wide tiles when possible; otherwise keep the
    # full (already small) channel dim as one block — no channel padding needed.
    return 128 if Cout % 128 == 0 else Cout


def _fused_matmul(patches_bf16, w_bf16, bias, residual=None, relu=True):
    """out[:M] = [relu]( (patches @ w) + bias [+ residual] ).  bf16 MXU, f32 accum."""
    M, K = patches_bf16.shape
    _, Cout = w_bf16.shape

    # Pad the contraction dim only when it is not 128-aligned (conv1 / 64-ch stages).
    Kp = _round_up(K, 128)
    if Kp != K:
        patches_bf16 = jnp.pad(patches_bf16, ((0, 0), (0, Kp - K)))
        w_bf16 = jnp.pad(w_bf16, ((0, Kp - K), (0, 0)))

    TM = _choose_m_tile(M)
    TN = _choose_n_tile(Cout)
    Mp = _round_up(M, TM)
    if Mp != M:
        patches_bf16 = jnp.pad(patches_bf16, ((0, Mp - M), (0, 0)))

    bp = bias.reshape(1, Cout).astype(jnp.float32)

    grid = (Mp // TM, Cout // TN)
    x_spec = pl.BlockSpec((TM, Kp), lambda i, j: (i, 0))
    w_spec = pl.BlockSpec((Kp, TN), lambda i, j: (0, j))
    b_spec = pl.BlockSpec((1, TN), lambda i, j: (0, j))
    o_spec = pl.BlockSpec((TM, TN), lambda i, j: (i, j))
    out_shape = jax.ShapeDtypeStruct((Mp, Cout), jnp.float32)
    cparams = pltpu.CompilerParams(
        dimension_semantics=("parallel", "parallel"),
        vmem_limit_bytes=_vmem_limit_bytes(),
    )

    if residual is None:
        out = pl.pallas_call(
            functools.partial(_conv_bias_kernel, relu=relu),
            out_shape=out_shape,
            grid=grid,
            in_specs=[x_spec, w_spec, b_spec],
            out_specs=o_spec,
            compiler_params=cparams,
        )(patches_bf16, w_bf16, bp)
    else:
        rp = residual.astype(jnp.float32)
        if Mp != M:
            rp = jnp.pad(rp, ((0, Mp - M), (0, 0)))
        out = pl.pallas_call(
            _conv_bias_add_relu_kernel,
            out_shape=out_shape,
            grid=grid,
            in_specs=[x_spec, w_spec, b_spec, o_spec],
            out_specs=o_spec,
            compiler_params=cparams,
        )(patches_bf16, w_bf16, bp, rp)

    return out[:M] if Mp != M else out


def _im2col(x, kh, kw, stride, pad):
    """x: NHWC -> patches (N*OH*OW, kh*kw*C), matching weight layout (kh,kw,Cin,Cout)."""
    N, H, W, C = x.shape
    xp = jnp.pad(x, ((0, 0), (pad, pad), (pad, pad), (0, 0)))
    OH = (H + 2 * pad - kh) // stride + 1
    OW = (W + 2 * pad - kw) // stride + 1
    cols = []
    for i in range(kh):
        for j in range(kw):
            cols.append(xp[:, i:i + stride * OH:stride, j:j + stride * OW:stride, :])
    patches = jnp.stack(cols, axis=3)  # (N, OH, OW, kh*kw, C)
    return patches.reshape(N * OH * OW, kh * kw * C), OH, OW


def conv_bn(x, w, scale, bias, stride, pad, relu=True, residual=None):
    """x: NHWC f32, w: PyTorch (Cout, Cin, kh, kw). Returns NHWC f32."""
    N = x.shape[0]
    Cout, Cin, kh, kw = w.shape
    # TODO(synk): stream the kh*kw taps through a reduction grid axis / manual strided
    # DMA instead of materializing the im2col matrix in HBM (next big win; needs
    # memory_space=pl.ANY + make_async_copy for strided tap slabs).
    patches, OH, OW = _im2col(x.astype(jnp.bfloat16), kh, kw, stride, pad)
    w2 = jnp.transpose(w, (2, 3, 1, 0)).reshape(kh * kw * Cin, Cout)
    w2 = (w2 * scale[None, :]).astype(jnp.bfloat16)  # fold BN scale into the weights
    r = residual.reshape(N * OH * OW, Cout) if residual is not None else None
    out = _fused_matmul(patches, w2, bias, residual=r, relu=relu)
    return out.reshape(N, OH, OW, Cout)


def maxpool_3x3_s2(x):
    """PyTorch MaxPool2d(kernel_size=3, stride=2, padding=1) on NHWC input."""
    N, H, W, C = x.shape
    kh = kw = 3
    stride, pad = 2, 1
    neg = jnp.finfo(jnp.float32).min
    xp = jnp.pad(x, ((0, 0), (pad, pad), (pad, pad), (0, 0)), constant_values=neg)
    OH = (H + 2 * pad - kh) // stride + 1
    OW = (W + 2 * pad - kw) // stride + 1
    cols = []
    for i in range(kh):
        for j in range(kw):
            cols.append(xp[:, i:i + stride * OH:stride, j:j + stride * OW:stride, :])
    # (9, M, C): 9 window taps per output position.
    stacked = jnp.stack(cols, axis=0).reshape(kh * kw, N * OH * OW, C)

    M = N * OH * OW
    TM = min(512, _round_up(M, 8))
    Mp = _round_up(M, TM)
    if Mp != M:
        stacked = jnp.pad(stacked, ((0, 0), (0, Mp - M), (0, 0)), constant_values=neg)

    grid = (Mp // TM,)
    out = pl.pallas_call(
        _maxpool_kernel,
        out_shape=jax.ShapeDtypeStruct((Mp, C), jnp.float32),
        grid=grid,
        in_specs=[pl.BlockSpec((kh * kw, TM, C), lambda i: (0, i, 0))],
        out_specs=pl.BlockSpec((TM, C), lambda i: (i, 0)),
        compiler_params=pltpu.CompilerParams(
            dimension_semantics=("parallel",),
            vmem_limit_bytes=_vmem_limit_bytes(),
        ),
    )(stacked)
    out = out[:M] if Mp != M else out
    return out.reshape(N, OH, OW, C)


# ---------------------------------------------------------------------------
# Deterministic parameter construction (ResNet18 topology)
# ---------------------------------------------------------------------------
def _init_conv(key, cout, cin, kh, kw):
    return jax.random.normal(key, (cout, cin, kh, kw), jnp.float32) * 0.05


def _init_bn(key, c, eps=1e-5):
    k1, k2, k3, k4 = jax.random.split(key, 4)
    gamma = 1.0 + 0.1 * jax.random.normal(k1, (c,), jnp.float32)
    beta = 0.1 * jax.random.normal(k2, (c,), jnp.float32)
    mean = 0.1 * jax.random.normal(k3, (c,), jnp.float32)
    var = 1.0 + 0.1 * jnp.abs(jax.random.normal(k4, (c,), jnp.float32))
    scale = gamma / jnp.sqrt(var + eps)
    bias = beta - mean * scale
    return scale, bias


def init_backbone_params(key):
    keys = iter(jax.random.split(key, 64))
    params = {
        "conv1_w": _init_conv(next(keys), 64, 3, 7, 7),
        "bn1": _init_bn(next(keys), 64),
    }
    # (cin, cout, stride of first block) for res2..res5; 2 BasicBlocks per stage.
    stages = [(64, 64, 1), (64, 128, 2), (128, 256, 2), (256, 512, 2)]
    for si, (cin, cout, stride) in enumerate(stages, start=2):
        blocks = []
        for b in range(2):
            bc_in = cin if b == 0 else cout
            s = stride if b == 0 else 1
            blk = {
                "conv1_w": _init_conv(next(keys), cout, bc_in, 3, 3),
                "bn1": _init_bn(next(keys), cout),
                "conv2_w": _init_conv(next(keys), cout, cout, 3, 3),
                "bn2": _init_bn(next(keys), cout),
                "stride": s,
            }
            if s != 1 or bc_in != cout:
                blk["down_w"] = _init_conv(next(keys), cout, bc_in, 1, 1)
                blk["down_bn"] = _init_bn(next(keys), cout)
            blocks.append(blk)
        params[f"res{si}"] = blocks
    return params


# ---------------------------------------------------------------------------
# Forward pass (mirrors BackBoneNet.forward)
# ---------------------------------------------------------------------------
def _basic_block(x, blk):
    s = blk["stride"]
    out = conv_bn(x, blk["conv1_w"], *blk["bn1"], stride=s, pad=1, relu=True)
    if "down_w" in blk:
        identity = conv_bn(x, blk["down_w"], *blk["down_bn"], stride=s, pad=0, relu=False)
    else:
        identity = x
    # second conv, BN, residual add and final ReLU fused into one Pallas kernel
    return conv_bn(out, blk["conv2_w"], *blk["bn2"], stride=1, pad=1,
                   relu=True, residual=identity)


def backbone_forward(x_nchw, params, out_features):
    # NOTE: frozen BN vs plain BN has identical eval-mode numerics; BN is folded into
    # the weights/bias, so `freeze_at` does not change the forward computation here.
    x = jnp.transpose(x_nchw.astype(jnp.float32), (0, 2, 3, 1))  # NCHW -> NHWC
    out = {}
    # res1: conv1 (7x7/s2) + bn1 + relu + maxpool(3x3/s2)
    x = conv_bn(x, params["conv1_w"], *params["bn1"], stride=2, pad=3, relu=True)
    x = maxpool_3x3_s2(x)
    if "res1" in out_features:
        out["res1"] = jnp.transpose(x, (0, 3, 1, 2))
    for name in ("res2", "res3", "res4", "res5"):
        for blk in params[name]:
            x = _basic_block(x, blk)
        if name in out_features:
            out[name] = jnp.transpose(x, (0, 3, 1, 2))
    return out


if __name__ == "__main__":
    key = jax.random.PRNGKey(0)
    pkey, xkey = jax.random.split(key)
    params = init_backbone_params(pkey)

    # cfg equivalent: model_name='resnet18', out_features=['res2','res3','res4','res5']
    out_features = ("res2", "res3", "res4", "res5")

    x = jax.random.normal(xkey, (2, 3, 32, 32), jnp.float32)  # NCHW, like PyTorch
    outs = backbone_forward(x, params, out_features)
    outs = jax.block_until_ready(outs)

    expected = {
        "res2": (2, 64, 8, 8),
        "res3": (2, 128, 4, 4),
        "res4": (2, 256, 2, 2),
        "res5": (2, 512, 1, 1),
    }
    for k, shp in expected.items():
        assert outs[k].shape == shp, (k, outs[k].shape, shp)
        assert bool(jnp.all(jnp.isfinite(outs[k])))
    print("KERNEL_OK")
</pallas_src>

<mosaic_0001>
module attributes {stable_mosaic.version = 11 : i64} {
  func.func @_conv_bias_kernel(%arg0: i32, %arg1: i32, %arg2: memref<128x256xbf16, #tpu.memory_space<vmem>>, %arg3: memref<256x64xbf16, #tpu.memory_space<vmem>>, %arg4: memref<1x64xf32, #tpu.memory_space<vmem>>, %arg5: memref<128x64xf32, #tpu.memory_space<vmem>>) attributes {dimension_semantics = [#tpu.dimension_semantics<parallel>, #tpu.dimension_semantics<parallel>], iteration_bounds = array<i64: 4, 1>, scalar_prefetch = 0 : i64, scratch_operands = 0 : i64, tpu.core_type = #tpu.core_type<tc>, window_params = [{transform_indices = @transform_0, window_bounds = array<i64: 128, 256>}, {transform_indices = @transform_1, window_bounds = array<i64: 256, 64>}, {transform_indices = @transform_2, window_bounds = array<i64: 1, 64>}, {transform_indices = @transform_3, window_bounds = array<i64: 128, 64>}]} {
    %c0 = arith.constant 0 : index
    %c0_0 = arith.constant 0 : index
    %0 = vector.load %arg2[%c0, %c0_0] : memref<128x256xbf16, #tpu.memory_space<vmem>>, vector<128x256xbf16>
    %c0_1 = arith.constant 0 : index
    %c0_2 = arith.constant 0 : index
    %1 = vector.load %arg3[%c0_1, %c0_2] : memref<256x64xbf16, #tpu.memory_space<vmem>>, vector<256x64xbf16>
    %cst = arith.constant dense<0.000000e+00> : vector<128x64xf32>
    %2 = tpu.matmul %0, %1, %cst {dimension_numbers = #tpu.dot_dimension_numbers<[1], [0], [0], [1], [0, 0, 1, 1], [], []>} : vector<128x256xbf16>, vector<256x64xbf16>, vector<128x64xf32> -> vector<128x64xf32>
    %c0_3 = arith.constant 0 : index
    %c0_4 = arith.constant 0 : index
    %3 = vector.load %arg4[%c0_3, %c0_4] : memref<1x64xf32, #tpu.memory_space<vmem>>, vector<1x64xf32>
    %4 = vector.broadcast %3 : vector<1x64xf32> to vector<128x64xf32>
    %5 = arith.addf %2, %4 : vector<128x64xf32>
    %cst_5 = arith.constant 0.000000e+00 : f32
    %6 = vector.broadcast %cst_5 : f32 to vector<128x64xf32>
    %7 = arith.maximumf %5, %6 : vector<128x64xf32>
    %c0_6 = arith.constant 0 : index
    %c0_7 = arith.constant 0 : index
    %8 = vector.load %arg5[%c0_6, %c0_7] : memref<128x64xf32, #tpu.memory_space<vmem>>, vector<128x64xf32>
    tpu.vector_store %arg5[%c0_6, %c0_7], %7 {strides = array<i32>} : memref<128x64xf32, #tpu.memory_space<vmem>>, vector<128x64xf32>,
    return
  }
  func.func @transform_0(%arg0: i32, %arg1: i32) -> (i32, i32) {
    %c0_i32 = arith.constant 0 : i32
    %c0_i32_0 = arith.constant 0 : i32
    return %arg0, %c0_i32 : i32, i32
  }
  func.func @transform_1(%arg0: i32, %arg1: i32) -> (i32, i32) {
    %c0_i32 = arith.constant 0 : i32
    %c0_i32_0 = arith.constant 0 : i32
    return %c0_i32, %arg1 : i32, i32
  }
  func.func @transform_2(%arg0: i32, %arg1: i32) -> (i32, i32) {
    %c0_i32 = arith.constant 0 : i32
    %c0_i32_0 = arith.constant 0 : i32
    return %c0_i32, %arg1 : i32, i32
  }
  func.func @transform_3(%arg0: i32, %arg1: i32) -> (i32, i32) {
    %c0_i32 = arith.constant 0 : i32
    return %arg0, %arg1 : i32, i32
  }
}

</mosaic_0001>

<bundles_post_ra>
// kernel: tpu_custom_call.1
= control target key start
LH: loop header
LB: loop body
LE: loop exit
PB: predicated region body
PF: predicated region fallthrough
CT: control target
= control target key end

     0   :  { %8 = vsyncpa [#allocation3], 0  ;;  %s1299_s0 = inlined_call_operand.hbm [shape: bf16[512,256], index: 0, kind: input, shape index: {}]   ;;  %s1300_s1 = inlined_call_operand.vmem [shape: bf16[256,64], index: 1, kind: input, shape index: {}]   ;;  %s1301_s2 = inlined_call_operand.vmem [shape: f32[1,64], index: 2, kind: input, shape index: {}]   ;;  %s1302_s3 = inlined_call_operand.vmem [shape: f32[512,64], index: 3, kind: output, shape index: {}]  }
   0x1   :  { %10 = vsyncpa [#allocation3 + $0x1], 0  ;;  %s1075_s12 = smov 0   ;;  %s1077_s13 = smov 0  }
   0x2   :  { %s1079_s14 = smov 0   ;;  %s1081_s15 = smov 0  }
   0x3   :  { %s1083_s16 = smov 0   ;;  %s1085_s17 = smov 0  }
   0x4 LB: > { %s719_s18 = sadd.s32 4294967295, %s1051_s17   ;;  %s28_s19 = sadd.s32 1, %s1047_s16  ;;  %s1051_s17 = sphi %s1085_s17, %s16_s17   ;;  %s1047_s16 = sphi %s1083_s16, %s1309_s16   ;;  %s1043_s15 = sphi %s1081_s15, %s1308_s15   ;;  %s1039_s14 = sphi %s1079_s14, %s1307_s14   ;;  %s1035_s13 = sphi %s1077_s13, %s1306_s13   ;;  %s1031_s12 = sphi %s1075_s12, %s1305_s12  }
   0x5   : > { %p30_p0 = scmp.ge.s32.totalorder %s28_s19, 4  ;;  %s35_s20 = sadd.s32 1, %s1039_s14 }
   0x6   : > { %p42_p1 = scmp.ne.s32.totalorder %s1039_s14, %s1035_s13  ;;  %p43_p2 = scmp.eq.s32.totalorder %s1051_s17, 0 }
   0x7   : > { %s1311_s19 = smov (%p30_p0, %s28_s19), 0  ;;  %p48_p4 = scmp.ne.s32.totalorder %s1035_s13, %s1031_s12 }
   0x8   : > { %p1111_p3 = por %p43_p2, %p42_p1  ;;  %s32_s22 = ssub.s32 %s1047_s16, %s1311_s19 }
   0x9   : > { %p49_p5 = scmp.eq.s32.totalorder %s719_s18, 0  ;;  %p33_p6 = scmp.eq.s32.totalorder %s32_s22, 0 }
   0xa   : > { %p919_p8 = scmp.lt.s32.totalorder %s1051_s17, 4  ;;  %s165_s25 = sand.u32 1, %s1039_s14  }
   0xb   : > { %p1118_p7 = por %p49_p5, %p48_p4  ;;  %s864_s26 = sshll.u32 %s1047_s16, 7 }
   0xc   : > { %s1124_s24 = scalar_select %p33_p6, %s1039_s14, %s35_s20  }
   0xd   : > { %s725_s27 = sshll.u32 %s165_s25, 7  ;;  %s175_s30 = scalar_lea.hbm %s1299_s0, %s864_s26 }
   0xe   : > { %s176_s4 = sshll.u32 %s175_s30, 4  ;;  %s169_s5 = scalar_lea.vmem [#allocation2], %s725_s27  ;;  %s177_s4 = int_to_ptr.hbm [resolvable:$true] %s176_s4 }
   0xf   : > { %s178_s6 = sshll.u32 %s169_s5, 4  ;;  %p916_p9 = pnand %p919_p8, %p1111_p3  ;;  %s179_s6 = int_to_ptr.vmem [resolvable:$true] %s178_s6 }
  0x10   : > { %p729_p10 = scmp.ge.s32.totalorder %s1051_s17, 1  ;;  %p186_p11 = scmp.lt.s32.totalorder %s1051_s17, 5 }
  0x11   : > { %s166_s7 = scalar_lea.sflag [#allocation3], %s165_s25  ;;  %s1053_s8 = smov 128  }
  0x12   : > { %s1054_s9 = smov 8   ;;  %p187_p12 = pnand %p729_p10, %p186_p11 }
  0x13   : > { %918 = dma.hbm_to_vmem [thread:$0]  (!%p916_p9), %s177_s4, 2048, %s179_s6, %s166_s7, %s1053_s8, %s1053_s8, %s1054_s9  }
  0x14   : > { %190 = sbr.rel (%p187_p12) target bundleno = 253 (0xfd), region = 32  ;;  %s192_s10 = sand.u32 (!%p187_p12), 1, %s1035_s13  }
  0x15   : > { %s730_s11 = sshll.u32 (!%p187_p12), %s192_s10, 7  ;;  %s193_s12 = scalar_lea.sflag (!%p187_p12), [#allocation3], %s192_s10 }
  0x16   : > { %s1136_s18 = scalar_lea.vmem (!%p187_p12), [#allocation2], %s730_s11 }
  0x19   : > { %1026 = dma.done.wait (%p1118_p7), %s193_s12, 2048  }
  0x1a   : > { %1028 = vsyncadd (%p1118_p7), %s193_s12, 4294965248  ;;  %v888_v0 = vld [vmem:[%s1300_s1 + $0x38] sm:$0xff]  ;;  %v887_v2 = vld [vmem:[%s1300_s1 + $0x30] sm:$0xff]  ;;  %s731_s7 = sshll.u32 %s1043_s15, 4  ;;  %vm589_vm0 = vcmask 523264  }
  0x1b   : > { %v896_v1 = vld [vmem:[%s1300_s1 + $0x78] sm:$0xff]  ;;  %475 = vmatpush.bf16.msra.mxu0 %v888_v0  ;;  %897 = vmatpush.bf16.msra.mxu2 %v888_v0  ;;  %v895_v3 = vld [vmem:[%s1300_s1 + $0x70] sm:$0xff]  ;;  %v886_v4 = vld [vmem:[%s1300_s1 + $0x28] sm:$0xff]  ;;  %p239_p13 = scmp.lt.s32.totalorder %s731_s7, 63 }
  0x1c   : > { %524 = vmatpush.bf16.msra.mxu1 %v896_v1  ;;  %905 = vmatpush.bf16.msra.mxu3 %v896_v1  ;;  %v894_v5 = vld [vmem:[%s1300_s1 + $0x68] sm:$0xff]  ;;  %v885_v6 = vld [vmem:[%s1300_s1 + $0x20] sm:$0xff]  ;;  %v884_v8 = vld [vmem:[%s1300_s1 + $0x18] sm:$0xff] }
  0x1d   : > { %v893_v7 = vld [vmem:[%s1300_s1 + $0x60] sm:$0xff]  ;;  %v892_v9 = vld [vmem:[%s1300_s1 + $0x58] sm:$0xff]  ;;  %v883_v10 = vld [vmem:[%s1300_s1 + $0x10] sm:$0xff]  ;;  %s1313_s7 = smov (!%p239_p13, %s731_s7), 63 }
  0x1e   : > { %v891_v11 = vld [vmem:[%s1300_s1 + $0x50] sm:$0xff]  ;;  %v882_v12 = vld [vmem:[%s1300_s1 + $0x8] sm:$0xff]  ;;  %v881_v14 = vld [vmem:[%s1300_s1] sm:$0xff] }
  0x1f   : > { %476 = vmatpush.bf16.msra.mxu0 %v887_v2  ;;  %898 = vmatpush.bf16.msra.mxu2 %v887_v2  ;;  %v890_v13 = vld [vmem:[%s1300_s1 + $0x48] sm:$0xff]  ;;  %v889_v15 = vld [vmem:[%s1300_s1 + $0x40] sm:$0xff]  ;;  %v743_v28 = vld [vmem:[%s1136_s18 + $0x10] sm:$0xf] }
  0x20   : > { %525 = vmatpush.bf16.msra.mxu1 %v895_v3  ;;  %906 = vmatpush.bf16.msra.mxu3 %v895_v3  ;;  %v735_v16 = vld [vmem:[%s1136_s18] sm:$0xf]  ;;  %v866_v17 = vld [vmem:[%s1136_s18 + $0x4] sm:$0xf0]  ;;  %v865_v20 = vld [vmem:[%s1136_s18 + $0x4] sm:$0xf] }
  0x21   : > { %v767_v18 = vld [vmem:[%s1136_s18 + $0x40] sm:$0xf]  ;;  %v874_v19 = vld [vmem:[%s1136_s18 + $0x44] sm:$0xf0]  ;;  %v737_v21 = vld [vmem:[%s1136_s18 + $0x8] sm:$0xf0]  ;;  %v736_v24 = vor.u32 %v866_v17, %v735_v16 }
  0x22   : > { %v873_v22 = vld [vmem:[%s1136_s18 + $0x44] sm:$0xf]  ;;  %v769_v23 = vld [vmem:[%s1136_s18 + $0x48] sm:$0xf0]  ;;  %v768_v25 = vor.u32 %v874_v19, %v767_v18  ;;  %v740_v26 = vor.u32 %v865_v20, %v737_v21  ;;  %v868_v29 = vld [vmem:[%s1136_s18 + $0x14] sm:$0xf0] }
  0x23   : > { %477 = vmatpush.bf16.msra.mxu0 %v886_v4  ;;  %899 = vmatpush.bf16.msra.mxu2 %v886_v4  ;;  %v772_v27 = vor.u32 %v873_v22, %v769_v23  ;;  %v775_v30 = vld [vmem:[%s1136_s18 + $0x50] sm:$0xf]  ;;  %v876_v31 = vld [vmem:[%s1136_s18 + $0x54] sm:$0xf0]  ;;  %v867_v32 = vld [vmem:[%s1136_s18 + $0x14] sm:$0xf]  ;;  %v744_v36 = vor.u32 %v868_v29, %v743_v28 }
  0x24   : > { %526 = vmatpush.bf16.msra.mxu1 %v894_v5  ;;  %907 = vmatpush.bf16.msra.mxu3 %v894_v5  ;;  %v745_v33 = vld [vmem:[%s1136_s18 + $0x18] sm:$0xf0]  ;;  %v875_v34 = vld [vmem:[%s1136_s18 + $0x54] sm:$0xf]  ;;  %v776_v37 = vor.u32 %v876_v31, %v775_v30  ;;  %v751_v40 = vld [vmem:[%s1136_s18 + $0x20] sm:$0xf] }
  0x25   : > { %v777_v35 = vld [vmem:[%s1136_s18 + $0x58] sm:$0xf0]  ;;  %v748_v38 = vor.u32 %v867_v32, %v745_v33  ;;  %v870_v41 = vld [vmem:[%s1136_s18 + $0x24] sm:$0xf0]  ;;  %v783_v42 = vld [vmem:[%s1136_s18 + $0x60] sm:$0xf] }
  0x26   : > { %v780_v39 = vor.u32 %v875_v34, %v777_v35  ;;  %v878_v43 = vld [vmem:[%s1136_s18 + $0x64] sm:$0xf0]  ;;  %v869_v44 = vld [vmem:[%s1136_s18 + $0x24] sm:$0xf]  ;;  %v753_v45 = vld [vmem:[%s1136_s18 + $0x28] sm:$0xf0]  ;;  %v752_v48 = vor.u32 %v870_v41, %v751_v40 }
  0x27   : > { %478 = vmatpush.bf16.msra.mxu0 %v885_v6  ;;  %900 = vmatpush.bf16.msra.mxu2 %v885_v6  ;;  %v877_v46 = vld [vmem:[%s1136_s18 + $0x64] sm:$0xf]  ;;  %v785_v47 = vld [vmem:[%s1136_s18 + $0x68] sm:$0xf0]  ;;  %v784_v49 = vor.u32 %v878_v43, %v783_v42  ;;  %v756_v50 = vor.u32 %v869_v44, %v753_v45  ;;  %v759_v52 = vld [vmem:[%s1136_s18 + $0x30] sm:$0xf] }
  0x28   : > { %527 = vmatpush.bf16.msra.mxu1 %v893_v7  ;;  %908 = vmatpush.bf16.msra.mxu3 %v893_v7  ;;  %v788_v51 = vor.u32 %v877_v46, %v785_v47  ;;  %v872_v53 = vld [vmem:[%s1136_s18 + $0x34] sm:$0xf0]  ;;  %v791_v54 = vld [vmem:[%s1136_s18 + $0x70] sm:$0xf]  ;;  %v871_v56 = vld [vmem:[%s1136_s18 + $0x34] sm:$0xf] }
  0x29   : > { %v880_v55 = vld [vmem:[%s1136_s18 + $0x74] sm:$0xf0]  ;;  %v761_v57 = vld [vmem:[%s1136_s18 + $0x38] sm:$0xf0]  ;;  %v879_v58 = vld [vmem:[%s1136_s18 + $0x74] sm:$0xf]  ;;  %v760_v60 = vor.u32 %v872_v53, %v759_v52 }
  0x2a   : > { %v793_v59 = vld [vmem:[%s1136_s18 + $0x78] sm:$0xf0]  ;;  %v792_v61 = vor.u32 %v880_v55, %v791_v54  ;;  %v764_v62 = vor.u32 %v871_v56, %v761_v57  ;;  %v1226_v0 = vld [vmem:[%s1301_s2] ss:$0 sm:$0xff]  ;;  %s732_s18 = sshll.u32 %s1313_s7, 3 }
  0x2b   : > { %479 = vmatpush.bf16.msra.mxu0 %v884_v8  ;;  %901 = vmatpush.bf16.msra.mxu2 %v884_v8  ;;  %v796_v63 = vor.u32 %v879_v58, %v793_v59  ;;  %s1232_s12 = scalar_lea.vmem %s1302_s3, %s732_s18 }
  0x2c   : > { %528 = vmatpush.bf16.msra.mxu1 %v892_v9  ;;  %909 = vmatpush.bf16.msra.mxu3 %v892_v9 }
  0x2f   : > { %480 = vmatpush.bf16.msra.mxu0 %v883_v10  ;;  %902 = vmatpush.bf16.msra.mxu2 %v883_v10 }
  0x30   : > { %529 = vmatpush.bf16.msra.mxu1 %v891_v11  ;;  %910 = vmatpush.bf16.msra.mxu3 %v891_v11 }
  0x33   : > { %481 = vmatpush.bf16.msra.mxu0 %v882_v12  ;;  %903 = vmatpush.bf16.msra.mxu2 %v882_v12 }
  0x34   : > { %530 = vmatpush.bf16.msra.mxu1 %v890_v13  ;;  %911 = vmatpush.bf16.msra.mxu3 %v890_v13 }
  0x37   : > { %482 = vmatpush.bf16.msra.mxu0 %v881_v14  ;;  %904 = vmatpush.bf16.msra.mxu2 %v881_v14 }
  0x38   : > { %531 = vmatpush.bf16.msra.mxu1 %v889_v15  ;;  %912 = vmatpush.bf16.msra.mxu3 %v889_v15 }
  0x3a   : > { %483 = vmatmul.bf16.vlgmr.msra.gmra.mxu0 %v736_v24  ;;  %503 = vmatmul.bf16.vlgmr.msra.gmra.mxu2 %v768_v25 }
  0x3b   : > { %532 = vmatmul.bf16.vlgmr.msra.gmra.mxu1 %v740_v26  ;;  %552 = vmatmul.bf16.vlgmr.msra.gmra.mxu3 %v772_v27 }
  0x4a   : > { %488 = vmatmul.bf16.gmra.mxu0 %v744_v36  ;;  %508 = vmatmul.bf16.gmra.mxu2 %v776_v37 }
  0x4b   : > { %537 = vmatmul.bf16.gmra.mxu1 %v748_v38  ;;  %557 = vmatmul.bf16.gmra.mxu3 %v780_v39 }
  0x5a   : > { %493 = vmatmul.bf16.gmra.mxu0 %v752_v48  ;;  %513 = vmatmul.bf16.gmra.mxu2 %v784_v49 }
  0x5b   : > { %542 = vmatmul.bf16.gmra.mxu1 %v756_v50  ;;  %562 = vmatmul.bf16.gmra.mxu3 %v788_v51 }
  0x6a   : > { %498 = vmatmul.bf16.gmra.mxu0 %v760_v60  ;;  %518 = vmatmul.bf16.gmra.mxu2 %v792_v61 }
  0x6b   : > { %547 = vmatmul.bf16.gmra.mxu1 %v764_v62  ;;  %567 = vmatmul.bf16.gmra.mxu3 %v796_v63 }
  0xb7   : > { %v484_v1 = vpop.f32.mrf.mxu0 }
  0xb8   : > { %v485_v2 = vadd.f32 %v1226_v0, %v484_v1  ;;  %v533_v3 = vpop.f32.mrf.mxu1 }
  0xba   : > { %v534_v4 = vadd.f32 %v533_v3, %v485_v2 }
  0xbc   : > { %v573_v5 = vmax.f32 %v534_v4, 0.0 }
  0xbd   : > { %v504_v6 = vpop.f32.mrf.mxu2 }
  0xbe   : > { %590 = vst.msk [vmem:[%s1232_s12] sm:$0xff] %vm589_vm0, %v573_v5  ;;  %v505_v7 = vadd.f32 %v1226_v0, %v504_v6  ;;  %v553_v8 = vpop.f32.mrf.mxu3 }
  0xbf   : > { %v486_v9 = vpop.f32.mrf.mxu0 }
  0xc0   : > { %v554_v10 = vadd.f32 %v553_v8, %v505_v7  ;;  %v487_v11 = vadd.f32 %v1226_v0, %v486_v9  ;;  %v535_v12 = vpop.f32.mrf.mxu1 }
  0xc2   : > { %v581_v13 = vmax.f32 %v554_v10, 0.0  ;;  %v536_v14 = vadd.f32 %v535_v12, %v487_v11 }
  0xc4   : > { %598 = vst.msk [vmem:[%s1232_s12 + $0x40] sm:$0xff] %vm589_vm0, %v581_v13  ;;  %v574_v15 = vmax.f32 %v536_v14, 0.0 }
  0xc5   : > { %v506_v16 = vpop.f32.mrf.mxu2 }
  0xc6   : > { %591 = vst.msk [vmem:[%s1232_s12 + $0x8] sm:$0xff] %vm589_vm0, %v574_v15  ;;  %v507_v17 = vadd.f32 %v1226_v0, %v506_v16  ;;  %v555_v18 = vpop.f32.mrf.mxu3 }
  0xc7   : > { %v489_v19 = vpop.f32.mrf.mxu0 }
  0xc8   : > { %v556_v20 = vadd.f32 %v555_v18, %v507_v17  ;;  %v490_v21 = vadd.f32 %v1226_v0, %v489_v19  ;;  %v538_v22 = vpop.f32.mrf.mxu1 }
  0xca   : > { %v582_v23 = vmax.f32 %v556_v20, 0.0  ;;  %v539_v24 = vadd.f32 %v538_v22, %v490_v21 }
  0xcc   : > { %599 = vst.msk [vmem:[%s1232_s12 + $0x48] sm:$0xff] %vm589_vm0, %v582_v23  ;;  %v575_v25 = vmax.f32 %v539_v24, 0.0 }
  0xcd   : > { %v509_v26 = vpop.f32.mrf.mxu2 }
  0xce   : > { %592 = vst.msk [vmem:[%s1232_s12 + $0x10] sm:$0xff] %vm589_vm0, %v575_v25  ;;  %v510_v27 = vadd.f32 %v1226_v0, %v509_v26  ;;  %v558_v28 = vpop.f32.mrf.mxu3 }
  0xcf   : > { %v491_v29 = vpop.f32.mrf.mxu0 }
  0xd0   : > { %v559_v30 = vadd.f32 %v558_v28, %v510_v27  ;;  %v492_v31 = vadd.f32 %v1226_v0, %v491_v29  ;;  %v540_v32 = vpop.f32.mrf.mxu1 }
  0xd2   : > { %v583_v33 = vmax.f32 %v559_v30, 0.0  ;;  %v541_v34 = vadd.f32 %v540_v32, %v492_v31 }
  0xd4   : > { %600 = vst.msk [vmem:[%s1232_s12 + $0x50] sm:$0xff] %vm589_vm0, %v583_v33  ;;  %v576_v35 = vmax.f32 %v541_v34, 0.0 }
  0xd5   : > { %v511_v36 = vpop.f32.mrf.mxu2 }
  0xd6   : > { %593 = vst.msk [vmem:[%s1232_s12 + $0x18] sm:$0xff] %vm589_vm0, %v576_v35  ;;  %v512_v37 = vadd.f32 %v1226_v0, %v511_v36  ;;  %v560_v38 = vpop.f32.mrf.mxu3 }
  0xd7   : > { %v494_v39 = vpop.f32.mrf.mxu0 }
  0xd8   : > { %v561_v40 = vadd.f32 %v560_v38, %v512_v37  ;;  %v495_v41 = vadd.f32 %v1226_v0, %v494_v39  ;;  %v543_v42 = vpop.f32.mrf.mxu1 }
  0xda   : > { %v584_v43 = vmax.f32 %v561_v40, 0.0  ;;  %v544_v44 = vadd.f32 %v543_v42, %v495_v41 }
  0xdc   : > { %601 = vst.msk [vmem:[%s1232_s12 + $0x58] sm:$0xff] %vm589_vm0, %v584_v43  ;;  %v577_v45 = vmax.f32 %v544_v44, 0.0 }
  0xdd   : > { %v514_v46 = vpop.f32.mrf.mxu2 }
  0xde   : > { %594 = vst.msk [vmem:[%s1232_s12 + $0x20] sm:$0xff] %vm589_vm0, %v577_v45  ;;  %v515_v47 = vadd.f32 %v1226_v0, %v514_v46  ;;  %v563_v48 = vpop.f32.mrf.mxu3 }
  0xdf   : > { %v496_v49 = vpop.f32.mrf.mxu0 }
  0xe0   : > { %v564_v50 = vadd.f32 %v563_v48, %v515_v47  ;;  %v497_v51 = vadd.f32 %v1226_v0, %v496_v49  ;;  %v545_v52 = vpop.f32.mrf.mxu1 }
  0xe2   : > { %v585_v53 = vmax.f32 %v564_v50, 0.0  ;;  %v546_v54 = vadd.f32 %v545_v52, %v497_v51 }
  0xe4   : > { %602 = vst.msk [vmem:[%s1232_s12 + $0x60] sm:$0xff] %vm589_vm0, %v585_v53  ;;  %v578_v55 = vmax.f32 %v546_v54, 0.0 }
  0xe5   : > { %v516_v56 = vpop.f32.mrf.mxu2 }
  0xe6   : > { %595 = vst.msk [vmem:[%s1232_s12 + $0x28] sm:$0xff] %vm589_vm0, %v578_v55  ;;  %v517_v57 = vadd.f32 %v1226_v0, %v516_v56  ;;  %v565_v58 = vpop.f32.mrf.mxu3 }
  0xe7   : > { %v499_v59 = vpop.f32.mrf.mxu0 }
  0xe8   : > { %v566_v60 = vadd.f32 %v565_v58, %v517_v57  ;;  %v500_v61 = vadd.f32 %v1226_v0, %v499_v59  ;;  %v548_v62 = vpop.f32.mrf.mxu1 }
  0xea   : > { %v586_v63 = vmax.f32 %v566_v60, 0.0  ;;  %v549_v1 = vadd.f32 %v548_v62, %v500_v61 }
  0xec   : > { %603 = vst.msk [vmem:[%s1232_s12 + $0x68] sm:$0xff] %vm589_vm0, %v586_v63  ;;  %v579_v2 = vmax.f32 %v549_v1, 0.0 }
  0xed   : > { %v519_v3 = vpop.f32.mrf.mxu2 }
  0xee   : > { %596 = vst.msk [vmem:[%s1232_s12 + $0x30] sm:$0xff] %vm589_vm0, %v579_v2  ;;  %v520_v4 = vadd.f32 %v1226_v0, %v519_v3  ;;  %v568_v5 = vpop.f32.mrf.mxu3 }
  0xef   : > { %v501_v6 = vpop.f32.mrf.mxu0 }
  0xf0   : > { %v569_v7 = vadd.f32 %v568_v5, %v520_v4  ;;  %v502_v8 = vadd.f32 %v1226_v0, %v501_v6  ;;  %v550_v9 = vpop.f32.mrf.mxu1 }
  0xf2   : > { %v587_v10 = vmax.f32 %v569_v7, 0.0  ;;  %v551_v11 = vadd.f32 %v550_v9, %v502_v8 }
  0xf4   : > { %604 = vst.msk [vmem:[%s1232_s12 + $0x70] sm:$0xff] %vm589_vm0, %v587_v10  ;;  %v580_v12 = vmax.f32 %v551_v11, 0.0 }
  0xf5   : > { %v521_v13 = vpop.f32.mrf.mxu2 }
  0xf6   : > { %597 = vst.msk [vmem:[%s1232_s12 + $0x38] sm:$0xff] %vm589_vm0, %v580_v12  ;;  %v522_v14 = vadd.f32 %v1226_v0, %v521_v13  ;;  %v570_v15 = vpop.f32.mrf.mxu3 }
  0xf8   : > { %v571_v16 = vadd.f32 %v570_v15, %v522_v14 }
  0xfa   : > { %v588_v17 = vmax.f32 %v571_v16, 0.0 }
  0xfc   : > { %605 = vst.msk [vmem:[%s1232_s12 + $0x78] sm:$0xff] %vm589_vm0, %v588_v17 }
  0xfd PF: > { %s16_s17 = sadd.s32 1, %s1051_s17   ;;  %s1305_s12 = smov %s1035_s13 }
  0xfe   : > { %p13_p0 = scmp.ge.s32.totalorder %s16_s17, 6   ;;  %s1306_s13 = smov %s1039_s14 }
  0xff   : > { %s1307_s14 = smov %s1124_s24  ;;  %s1308_s15 = smov %s1047_s16 }
 0x100   : > { %s1309_s16 = smov %s1311_s19  ;;  %15 = sbr.rel (!%p13_p0) target bundleno = 4 (0x4), region = 78 }
 0x105   :  { %634 = vsyncpa [#allocation3], 1 }
 0x106   :  { %636 = vsyncpa [#allocation3 + $0x1], 1 }

</bundles_post_ra>
